<compile_context>
chip_gen: v6e
topology: v6e:2x2x1
jax: 0.10.0
libtpu: 0.0.40
codegen_flags: <defaults>
</compile_context>

<pallas_src>
import numpy as np
from itertools import combinations

import jax
import jax.numpy as jnp
from jax import lax
from jax.experimental import pallas as pl
from jax.experimental.pallas import tpu as pltpu

NUM_SINKHORN_ITERS = 5  # TODO(synk): sinkhorn_match2 source unavailable; iteration count is a reasonable default.
_NEG = -1e30  # plain Python float -> jaxpr literal (no captured constant)


def _round_up(x, m):
    return (x + m - 1) // m * m


def _sinkhorn_match_kernel(db_ref, d1_ref, d2_ref, p_ref, match_ref):
    """Single-invocation kernel (no grid): everything fits comfortably in VMEM.

    db_ref    : SMEM (1, 1)   f32  dustbin score (DB_percentage)
    d1_ref    : VMEM (N1, D)  f32  desc1 (lane-dense, D on lanes)
    d2_ref    : VMEM (N2, D)  f32  desc2 (lane-dense, D on lanes)
    p_ref     : VMEM (RP, CP) f32  padded log-assignment matrix (valid: [:N1+1,:N2+1])
    match_ref : VMEM (RP, CL) i32  per-row argmax broadcast across lanes (valid: [:N1, 0])
    """
    n1, d = d1_ref.shape
    n2, _ = d2_ref.shape
    rp, cp = p_ref.shape  # (8,128)-aligned working shape

    d1 = d1_ref[...].astype(jnp.float32)
    d2 = d2_ref[...].astype(jnp.float32)

    # Pad on the sublane axis only (lane axis stays D); keeps everything aligned.
    if rp > n1:
        d1 = jnp.concatenate([d1, jnp.zeros((rp - n1, d), jnp.float32)], axis=0)  # (RP, D)
    if cp > n2:
        d2 = jnp.concatenate([d2, jnp.zeros((cp - n2, d), jnp.float32)], axis=0)  # (CP, D)

    # Score matrix on the MXU, contracting on D for both operands (A @ B.T).
    s = lax.dot_general(
        d1, d2,
        dimension_numbers=(((1,), (1,)), ((), ())),
        preferred_element_type=jnp.float32,
    )  # (RP, CP); padded rows/cols come out 0 and are overwritten below.

    row_ids = lax.broadcasted_iota(jnp.int32, (rp, cp), 0)
    col_ids = lax.broadcasted_iota(jnp.int32, (rp, cp), 1)
    valid = jnp.logical_and(row_ids <= n1, col_ids <= n2)
    is_bin = jnp.logical_and(valid, jnp.logical_or(row_ids == n1, col_ids == n2))
    db = db_ref[0, 0]

    z = jnp.where(is_bin, db, jnp.where(valid, s, _NEG))

    def body(_, z):
        # Row log-softmax (reduction over lanes), then re-mask the padding so
        # padded rows never contribute mass to the column normalization.
        m = jnp.max(z, axis=1, keepdims=True)
        z = z - (m + jnp.log(jnp.sum(jnp.exp(z - m), axis=1, keepdims=True)))
        z = jnp.where(valid, z, _NEG)
        # Column log-softmax (reduction over sublanes), then re-mask.
        m = jnp.max(z, axis=0, keepdims=True)
        z = z - (m + jnp.log(jnp.sum(jnp.exp(z - m), axis=0, keepdims=True)))
        z = jnp.where(valid, z, _NEG)
        return z

    z = lax.fori_loop(0, NUM_SINKHORN_ITERS, body, z, unroll=True)

    p_ref[...] = z  # unmasked, lane-dense store

    # Hard match: per row, first-occurrence argmax column over [0, N2] (dustbin
    # included). Padded columns sit at -1e30 and can never win; padded rows
    # produce garbage that is sliced away in the wrapper.
    rmax = jnp.max(z, axis=1, keepdims=True)
    cand = jnp.where(z >= rmax, col_ids, cp)
    match2d = jnp.min(cand, axis=1, keepdims=True).astype(jnp.int32)  # (RP, 1)
    match_ref[...] = jnp.broadcast_to(match2d, match_ref.shape)       # lane-dense store


def sinkhorn_match2(desc1, desc2, db_percentage):
    n1, d = desc1.shape
    n2, _ = desc2.shape
    rp = _round_up(n1 + 1, 8)     # sublane-aligned rows (incl. dustbin row)
    cp = _round_up(n2 + 1, 128)   # lane-aligned cols (incl. dustbin col)
    db = jnp.reshape(jnp.asarray(db_percentage, jnp.float32), (1, 1))

    p_pad, match_pad = pl.pallas_call(
        _sinkhorn_match_kernel,
        out_shape=(
            jax.ShapeDtypeStruct((rp, cp), jnp.float32),
            jax.ShapeDtypeStruct((rp, 128), jnp.int32),
        ),
        in_specs=[
            pl.BlockSpec(memory_space=pltpu.MemorySpace.SMEM),   # DB_percentage scalar
            pl.BlockSpec(memory_space=pltpu.MemorySpace.VMEM),   # desc1 (N1, D)
            pl.BlockSpec(memory_space=pltpu.MemorySpace.VMEM),   # desc2 (N2, D)
        ],
        out_specs=(
            pl.BlockSpec(memory_space=pltpu.MemorySpace.VMEM),
            pl.BlockSpec(memory_space=pltpu.MemorySpace.VMEM),
        ),
    )(db, desc1.astype(jnp.float32), desc2.astype(jnp.float32))

    p_match = p_pad[: n1 + 1, : n2 + 1]
    match = match_pad[:n1, 0]
    return p_match, match


class GATPallas:
    """JAX/Pallas port of GAT (forward path only)."""

    def __init__(self, in_channels=128, out_channels=128, key=jax.random.PRNGKey(0)):
        self.DB_percentage = jnp.ones((1,), jnp.float32) * 0.4
        self.hid = 1
        self.in_head = 128
        self.out_head = 1
        # GATConv parameters (declared in __init__ but never used by forward).
        k1, k2, k3, k4 = jax.random.split(key, 4)
        self.conv1_lin = 0.1 * jax.random.normal(k1, (self.hid * self.in_head, in_channels), jnp.float32)
        self.conv1_att = 0.1 * jax.random.normal(k2, (1, self.in_head, 2 * self.hid), jnp.float32)
        self.conv2_lin = 0.1 * jax.random.normal(k3, (out_channels * self.out_head, self.hid * self.in_head), jnp.float32)
        self.conv2_att = 0.1 * jax.random.normal(k4, (1, self.out_head, 2 * out_channels), jnp.float32)

    @staticmethod
    def get_edge_index(desc1, desc2):
        # Pure-Python index bookkeeping, mirrored for fidelity; unused by forward's return.
        len1, len2 = len(desc1), len(desc2)
        list1 = list(range(len1))
        list2 = list(range(len1, len1 + len2))
        inside_temp = list(combinations(list1, 2)) + list(combinations(list2, 2))
        inside_edge = [[], []]
        for s, dd in inside_temp:
            inside_edge[0].append(s)
            inside_edge[1].append(dd)
        temp = inside_edge[0]
        inside_edge[0] = inside_edge[0] + inside_edge[1]
        inside_edge[1] = inside_edge[1] + temp
        cross_edge = [list(np.sort(list1 * len2)), list(list2 * len1)]
        temp = cross_edge[0]
        cross_edge[0] = cross_edge[0] + cross_edge[1]
        cross_edge[1] = cross_edge[1] + temp
        return (np.asarray(inside_edge, np.int64), np.asarray(cross_edge, np.int64))

    def forward(self, data):
        desc1, desc2 = data["desc1"], data["desc2"]
        _inside_edge, _cross_edge = self.get_edge_index(desc1, desc2)  # computed, unused (as in torch source)
        x = jnp.concatenate((jnp.asarray(desc1, jnp.float32), jnp.asarray(desc2, jnp.float32)))
        d1 = x[0: len(desc1)]
        d2 = x[len(desc1):]
        p_match, match = sinkhorn_match2(d1, d2, self.DB_percentage)
        return p_match, match


if __name__ == "__main__":
    key = jax.random.PRNGKey(0)
    k1, k2, k3 = jax.random.split(key, 3)

    N1, N2, D = 16, 16, 128  # in_channels=128 descriptors, small keypoint counts
    desc1 = jax.random.normal(k1, (N1, D), jnp.float32)
    desc2 = jax.random.normal(k2, (N2, D), jnp.float32)
    # L2-normalize like typical feature descriptors (keeps scores well-scaled).
    desc1 = desc1 / jnp.linalg.norm(desc1, axis=-1, keepdims=True)
    desc2 = desc2 / jnp.linalg.norm(desc2, axis=-1, keepdims=True)

    model = GATPallas(in_channels=128, out_channels=128, key=k3)
    p_match, match = model.forward({"desc1": np.asarray(desc1), "desc2": np.asarray(desc2)})
    jax.block_until_ready((p_match, match))

    assert p_match.shape == (N1 + 1, N2 + 1) and p_match.dtype == jnp.float32
    assert match.shape == (N1,) and match.dtype == jnp.int32
    assert bool(jnp.all(jnp.isfinite(p_match)))
    assert bool(jnp.all((match >= 0) & (match <= N2)))
    print("KERNEL_OK")
</pallas_src>

<mosaic_0001>
module attributes {stable_mosaic.version = 11 : i64} {
  func.func @_sinkhorn_match_kernel(%arg0: memref<1x1xf32, #tpu.memory_space<smem>>, %arg1: memref<16x128xf32, #tpu.memory_space<vmem>>, %arg2: memref<16x128xf32, #tpu.memory_space<vmem>>, %arg3: memref<24x128xf32, #tpu.memory_space<vmem>>, %arg4: memref<24x128xi32, #tpu.memory_space<vmem>>) attributes {dimension_semantics = [], scalar_prefetch = 0 : i64, scratch_operands = 0 : i64, tpu.core_type = #tpu.core_type<tc>} {
    %c0 = arith.constant 0 : index
    %c0_0 = arith.constant 0 : index
    %0 = vector.load %arg1[%c0, %c0_0] : memref<16x128xf32, #tpu.memory_space<vmem>>, vector<16x128xf32>
    %c0_1 = arith.constant 0 : index
    %c0_2 = arith.constant 0 : index
    %1 = vector.load %arg2[%c0_1, %c0_2] : memref<16x128xf32, #tpu.memory_space<vmem>>, vector<16x128xf32>
    %cst = arith.constant 0.000000e+00 : f32
    %2 = vector.broadcast %cst : f32 to vector<8x128xf32>
    %3 = tpu.concatenate %0, %2 in 0 : vector<16x128xf32>, vector<8x128xf32> -> vector<24x128xf32>
    %cst_3 = arith.constant 0.000000e+00 : f32
    %4 = vector.broadcast %cst_3 : f32 to vector<112x128xf32>
    %5 = tpu.concatenate %1, %4 in 0 : vector<16x128xf32>, vector<112x128xf32> -> vector<128x128xf32>
    %cst_4 = arith.constant dense<0.000000e+00> : vector<24x128xf32>
    %6 = tpu.matmul %3, %5, %cst_4 {dimension_numbers = #tpu.dot_dimension_numbers<[1], [1], [0], [0], [0, 0, 1, 0], [], []>} : vector<24x128xf32>, vector<128x128xf32>, vector<24x128xf32> -> vector<24x128xf32>
    %7 = tpu.iota {dimensions = array<i32: 0>} : vector<24x128xi32>
    %8 = tpu.iota {dimensions = array<i32: 1>} : vector<24x128xi32>
    %c16_i32 = arith.constant 16 : i32
    %9 = vector.broadcast %c16_i32 : i32 to vector<24x128xi32>
    %10 = arith.cmpi sle, %7, %9 : vector<24x128xi32>
    %c16_i32_5 = arith.constant 16 : i32
    %11 = vector.broadcast %c16_i32_5 : i32 to vector<24x128xi32>
    %12 = arith.cmpi sle, %8, %11 : vector<24x128xi32>
    %13 = arith.andi %10, %12 : vector<24x128xi1>
    %c16_i32_6 = arith.constant 16 : i32
    %14 = vector.broadcast %c16_i32_6 : i32 to vector<24x128xi32>
    %15 = arith.cmpi eq, %7, %14 : vector<24x128xi32>
    %c16_i32_7 = arith.constant 16 : i32
    %16 = vector.broadcast %c16_i32_7 : i32 to vector<24x128xi32>
    %17 = arith.cmpi eq, %8, %16 : vector<24x128xi32>
    %18 = arith.ori %15, %17 : vector<24x128xi1>
    %19 = arith.andi %13, %18 : vector<24x128xi1>
    %c0_8 = arith.constant 0 : index
    %c0_9 = arith.constant 0 : index
    %20 = memref.load %arg0[%c0_8, %c0_9] : memref<1x1xf32, #tpu.memory_space<smem>>
    %cst_10 = arith.constant -1.000000e+30 : f32
    %21 = vector.broadcast %cst_10 : f32 to vector<24x128xf32>
    %22 = arith.select %13, %6, %21 : vector<24x128xi1>, vector<24x128xf32>
    %23 = vector.broadcast %20 : f32 to vector<24x128xf32>
    %24 = arith.select %19, %23, %22 : vector<24x128xi1>, vector<24x128xf32>
    %c0_i32 = arith.constant 0 : i32
    %cst_11 = arith.constant dense<0xFF800000> : vector<24xf32>
    %25 = vector.multi_reduction <maximumf>, %24, %cst_11 [1] : vector<24x128xf32> to vector<24xf32>
    %26 = vector.shape_cast %25 : vector<24xf32> to vector<24x1xf32>
    %27 = vector.broadcast %26 : vector<24x1xf32> to vector<24x128xf32>
    %28 = arith.subf %24, %27 : vector<24x128xf32>
    %29 = math.exp %28 : vector<24x128xf32>
    %cst_12 = arith.constant dense<0.000000e+00> : vector<24xf32>
    %30 = vector.multi_reduction <add>, %29, %cst_12 [1] : vector<24x128xf32> to vector<24xf32>
    %31 = vector.shape_cast %30 : vector<24xf32> to vector<24x1xf32>
    %32 = math.log %31 : vector<24x1xf32>
    %33 = arith.addf %26, %32 : vector<24x1xf32>
    %34 = vector.broadcast %33 : vector<24x1xf32> to vector<24x128xf32>
    %35 = arith.subf %24, %34 : vector<24x128xf32>
    %cst_13 = arith.constant -1.000000e+30 : f32
    %36 = vector.broadcast %cst_13 : f32 to vector<24x128xf32>
    %37 = arith.select %13, %35, %36 : vector<24x128xi1>, vector<24x128xf32>
    %cst_14 = arith.constant dense<0xFF800000> : vector<128xf32>
    %38 = vector.multi_reduction <maximumf>, %37, %cst_14 [0] : vector<24x128xf32> to vector<128xf32>
    %39 = vector.shape_cast %38 : vector<128xf32> to vector<1x128xf32>
    %40 = vector.broadcast %39 : vector<1x128xf32> to vector<24x128xf32>
    %41 = arith.subf %37, %40 : vector<24x128xf32>
    %42 = math.exp %41 : vector<24x128xf32>
    %cst_15 = arith.constant dense<0.000000e+00> : vector<128xf32>
    %43 = vector.multi_reduction <add>, %42, %cst_15 [0] : vector<24x128xf32> to vector<128xf32>
    %44 = vector.shape_cast %43 : vector<128xf32> to vector<1x128xf32>
    %45 = math.log %44 : vector<1x128xf32>
    %46 = arith.addf %39, %45 : vector<1x128xf32>
    %47 = vector.broadcast %46 : vector<1x128xf32> to vector<24x128xf32>
    %48 = arith.subf %37, %47 : vector<24x128xf32>
    %cst_16 = arith.constant -1.000000e+30 : f32
    %49 = vector.broadcast %cst_16 : f32 to vector<24x128xf32>
    %50 = arith.select %13, %48, %49 : vector<24x128xi1>, vector<24x128xf32>
    %c1_i32 = arith.constant 1 : i32
    %cst_17 = arith.constant dense<0xFF800000> : vector<24xf32>
    %51 = vector.multi_reduction <maximumf>, %50, %cst_17 [1] : vector<24x128xf32> to vector<24xf32>
    %52 = vector.shape_cast %51 : vector<24xf32> to vector<24x1xf32>
    %53 = vector.broadcast %52 : vector<24x1xf32> to vector<24x128xf32>
    %54 = arith.subf %50, %53 : vector<24x128xf32>
    %55 = math.exp %54 : vector<24x128xf32>
    %cst_18 = arith.constant dense<0.000000e+00> : vector<24xf32>
    %56 = vector.multi_reduction <add>, %55, %cst_18 [1] : vector<24x128xf32> to vector<24xf32>
    %57 = vector.shape_cast %56 : vector<24xf32> to vector<24x1xf32>
    %58 = math.log %57 : vector<24x1xf32>
    %59 = arith.addf %52, %58 : vector<24x1xf32>
    %60 = vector.broadcast %59 : vector<24x1xf32> to vector<24x128xf32>
    %61 = arith.subf %50, %60 : vector<24x128xf32>
    %cst_19 = arith.constant -1.000000e+30 : f32
    %62 = vector.broadcast %cst_19 : f32 to vector<24x128xf32>
    %63 = arith.select %13, %61, %62 : vector<24x128xi1>, vector<24x128xf32>
    %cst_20 = arith.constant dense<0xFF800000> : vector<128xf32>
    %64 = vector.multi_reduction <maximumf>, %63, %cst_20 [0] : vector<24x128xf32> to vector<128xf32>
    %65 = vector.shape_cast %64 : vector<128xf32> to vector<1x128xf32>
    %66 = vector.broadcast %65 : vector<1x128xf32> to vector<24x128xf32>
    %67 = arith.subf %63, %66 : vector<24x128xf32>
    %68 = math.exp %67 : vector<24x128xf32>
    %cst_21 = arith.constant dense<0.000000e+00> : vector<128xf32>
    %69 = vector.multi_reduction <add>, %68, %cst_21 [0] : vector<24x128xf32> to vector<128xf32>
    %70 = vector.shape_cast %69 : vector<128xf32> to vector<1x128xf32>
    %71 = math.log %70 : vector<1x128xf32>
    %72 = arith.addf %65, %71 : vector<1x128xf32>
    %73 = vector.broadcast %72 : vector<1x128xf32> to vector<24x128xf32>
    %74 = arith.subf %63, %73 : vector<24x128xf32>
    %cst_22 = arith.constant -1.000000e+30 : f32
    %75 = vector.broadcast %cst_22 : f32 to vector<24x128xf32>
    %76 = arith.select %13, %74, %75 : vector<24x128xi1>, vector<24x128xf32>
    %c2_i32 = arith.constant 2 : i32
    %cst_23 = arith.constant dense<0xFF800000> : vector<24xf32>
    %77 = vector.multi_reduction <maximumf>, %76, %cst_23 [1] : vector<24x128xf32> to vector<24xf32>
    %78 = vector.shape_cast %77 : vector<24xf32> to vector<24x1xf32>
    %79 = vector.broadcast %78 : vector<24x1xf32> to vector<24x128xf32>
    %80 = arith.subf %76, %79 : vector<24x128xf32>
    %81 = math.exp %80 : vector<24x128xf32>
    %cst_24 = arith.constant dense<0.000000e+00> : vector<24xf32>
    %82 = vector.multi_reduction <add>, %81, %cst_24 [1] : vector<24x128xf32> to vector<24xf32>
    %83 = vector.shape_cast %82 : vector<24xf32> to vector<24x1xf32>
    %84 = math.log %83 : vector<24x1xf32>
    %85 = arith.addf %78, %84 : vector<24x1xf32>
    %86 = vector.broadcast %85 : vector<24x1xf32> to vector<24x128xf32>
    %87 = arith.subf %76, %86 : vector<24x128xf32>
    %cst_25 = arith.constant -1.000000e+30 : f32
    %88 = vector.broadcast %cst_25 : f32 to vector<24x128xf32>
    %89 = arith.select %13, %87, %88 : vector<24x128xi1>, vector<24x128xf32>
    %cst_26 = arith.constant dense<0xFF800000> : vector<128xf32>
    %90 = vector.multi_reduction <maximumf>, %89, %cst_26 [0] : vector<24x128xf32> to vector<128xf32>
    %91 = vector.shape_cast %90 : vector<128xf32> to vector<1x128xf32>
    %92 = vector.broadcast %91 : vector<1x128xf32> to vector<24x128xf32>
    %93 = arith.subf %89, %92 : vector<24x128xf32>
    %94 = math.exp %93 : vector<24x128xf32>
    %cst_27 = arith.constant dense<0.000000e+00> : vector<128xf32>
    %95 = vector.multi_reduction <add>, %94, %cst_27 [0] : vector<24x128xf32> to vector<128xf32>
    %96 = vector.shape_cast %95 : vector<128xf32> to vector<1x128xf32>
    %97 = math.log %96 : vector<1x128xf32>
    %98 = arith.addf %91, %97 : vector<1x128xf32>
    %99 = vector.broadcast %98 : vector<1x128xf32> to vector<24x128xf32>
    %100 = arith.subf %89, %99 : vector<24x128xf32>
    %cst_28 = arith.constant -1.000000e+30 : f32
    %101 = vector.broadcast %cst_28 : f32 to vector<24x128xf32>
    %102 = arith.select %13, %100, %101 : vector<24x128xi1>, vector<24x128xf32>
    %c3_i32 = arith.constant 3 : i32
    %cst_29 = arith.constant dense<0xFF800000> : vector<24xf32>
    %103 = vector.multi_reduction <maximumf>, %102, %cst_29 [1] : vector<24x128xf32> to vector<24xf32>
    %104 = vector.shape_cast %103 : vector<24xf32> to vector<24x1xf32>
    %105 = vector.broadcast %104 : vector<24x1xf32> to vector<24x128xf32>
    %106 = arith.subf %102, %105 : vector<24x128xf32>
    %107 = math.exp %106 : vector<24x128xf32>
    %cst_30 = arith.constant dense<0.000000e+00> : vector<24xf32>
    %108 = vector.multi_reduction <add>, %107, %cst_30 [1] : vector<24x128xf32> to vector<24xf32>
    %109 = vector.shape_cast %108 : vector<24xf32> to vector<24x1xf32>
    %110 = math.log %109 : vector<24x1xf32>
    %111 = arith.addf %104, %110 : vector<24x1xf32>
    %112 = vector.broadcast %111 : vector<24x1xf32> to vector<24x128xf32>
    %113 = arith.subf %102, %112 : vector<24x128xf32>
    %cst_31 = arith.constant -1.000000e+30 : f32
    %114 = vector.broadcast %cst_31 : f32 to vector<24x128xf32>
    %115 = arith.select %13, %113, %114 : vector<24x128xi1>, vector<24x128xf32>
    %cst_32 = arith.constant dense<0xFF800000> : vector<128xf32>
    %116 = vector.multi_reduction <maximumf>, %115, %cst_32 [0] : vector<24x128xf32> to vector<128xf32>
    %117 = vector.shape_cast %116 : vector<128xf32> to vector<1x128xf32>
    %118 = vector.broadcast %117 : vector<1x128xf32> to vector<24x128xf32>
    %119 = arith.subf %115, %118 : vector<24x128xf32>
    %120 = math.exp %119 : vector<24x128xf32>
    %cst_33 = arith.constant dense<0.000000e+00> : vector<128xf32>
    %121 = vector.multi_reduction <add>, %120, %cst_33 [0] : vector<24x128xf32> to vector<128xf32>
    %122 = vector.shape_cast %121 : vector<128xf32> to vector<1x128xf32>
    %123 = math.log %122 : vector<1x128xf32>
    %124 = arith.addf %117, %123 : vector<1x128xf32>
    %125 = vector.broadcast %124 : vector<1x128xf32> to vector<24x128xf32>
    %126 = arith.subf %115, %125 : vector<24x128xf32>
    %cst_34 = arith.constant -1.000000e+30 : f32
    %127 = vector.broadcast %cst_34 : f32 to vector<24x128xf32>
    %128 = arith.select %13, %126, %127 : vector<24x128xi1>, vector<24x128xf32>
    %c4_i32 = arith.constant 4 : i32
    %cst_35 = arith.constant dense<0xFF800000> : vector<24xf32>
    %129 = vector.multi_reduction <maximumf>, %128, %cst_35 [1] : vector<24x128xf32> to vector<24xf32>
    %130 = vector.shape_cast %129 : vector<24xf32> to vector<24x1xf32>
    %131 = vector.broadcast %130 : vector<24x1xf32> to vector<24x128xf32>
    %132 = arith.subf %128, %131 : vector<24x128xf32>
    %133 = math.exp %132 : vector<24x128xf32>
    %cst_36 = arith.constant dense<0.000000e+00> : vector<24xf32>
    %134 = vector.multi_reduction <add>, %133, %cst_36 [1] : vector<24x128xf32> to vector<24xf32>
    %135 = vector.shape_cast %134 : vector<24xf32> to vector<24x1xf32>
    %136 = math.log %135 : vector<24x1xf32>
    %137 = arith.addf %130, %136 : vector<24x1xf32>
    %138 = vector.broadcast %137 : vector<24x1xf32> to vector<24x128xf32>
    %139 = arith.subf %128, %138 : vector<24x128xf32>
    %cst_37 = arith.constant -1.000000e+30 : f32
    %140 = vector.broadcast %cst_37 : f32 to vector<24x128xf32>
    %141 = arith.select %13, %139, %140 : vector<24x128xi1>, vector<24x128xf32>
    %cst_38 = arith.constant dense<0xFF800000> : vector<128xf32>
    %142 = vector.multi_reduction <maximumf>, %141, %cst_38 [0] : vector<24x128xf32> to vector<128xf32>
    %143 = vector.shape_cast %142 : vector<128xf32> to vector<1x128xf32>
    %144 = vector.broadcast %143 : vector<1x128xf32> to vector<24x128xf32>
    %145 = arith.subf %141, %144 : vector<24x128xf32>
    %146 = math.exp %145 : vector<24x128xf32>
    %cst_39 = arith.constant dense<0.000000e+00> : vector<128xf32>
    %147 = vector.multi_reduction <add>, %146, %cst_39 [0] : vector<24x128xf32> to vector<128xf32>
    %148 = vector.shape_cast %147 : vector<128xf32> to vector<1x128xf32>
    %149 = math.log %148 : vector<1x128xf32>
    %150 = arith.addf %143, %149 : vector<1x128xf32>
    %151 = vector.broadcast %150 : vector<1x128xf32> to vector<24x128xf32>
    %152 = arith.subf %141, %151 : vector<24x128xf32>
    %cst_40 = arith.constant -1.000000e+30 : f32
    %153 = vector.broadcast %cst_40 : f32 to vector<24x128xf32>
    %154 = arith.select %13, %152, %153 : vector<24x128xi1>, vector<24x128xf32>
    %c0_41 = arith.constant 0 : index
    %c0_42 = arith.constant 0 : index
    %155 = vector.load %arg3[%c0_41, %c0_42] : memref<24x128xf32, #tpu.memory_space<vmem>>, vector<24x128xf32>
    tpu.vector_store %arg3[%c0_41, %c0_42], %154 {strides = array<i32>} : memref<24x128xf32, #tpu.memory_space<vmem>>, vector<24x128xf32>,
    %cst_43 = arith.constant dense<0xFF800000> : vector<24xf32>
    %156 = vector.multi_reduction <maximumf>, %154, %cst_43 [1] : vector<24x128xf32> to vector<24xf32>
    %157 = vector.shape_cast %156 : vector<24xf32> to vector<24x1xf32>
    %158 = vector.broadcast %157 : vector<24x1xf32> to vector<24x128xf32>
    %159 = arith.cmpf oge, %154, %158 : vector<24x128xf32>
    %c128_i32 = arith.constant 128 : i32
    %160 = vector.broadcast %c128_i32 : i32 to vector<24x128xi32>
    %161 = arith.select %159, %8, %160 : vector<24x128xi1>, vector<24x128xi32>
    %cst_44 = arith.constant dense<2147483647> : vector<24xi32>
    %162 = vector.multi_reduction <minsi>, %161, %cst_44 [1] : vector<24x128xi32> to vector<24xi32>
    %163 = vector.shape_cast %162 : vector<24xi32> to vector<24x1xi32>
    %164 = vector.shape_cast %163 : vector<24x1xi32> to vector<24x1xi32>
    %165 = vector.broadcast %164 : vector<24x1xi32> to vector<24x128xi32>
    %c0_45 = arith.constant 0 : index
    %c0_46 = arith.constant 0 : index
    %166 = vector.load %arg4[%c0_45, %c0_46] : memref<24x128xi32, #tpu.memory_space<vmem>>, vector<24x128xi32>
    tpu.vector_store %arg4[%c0_45, %c0_46], %165 {strides = array<i32>} : memref<24x128xi32, #tpu.memory_space<vmem>>, vector<24x128xi32>,
    return
  }
}

</mosaic_0001>

<bundles_post_ra>
// kernel: tpu_custom_call.1
= control target key start
LH: loop header
LB: loop body
LE: loop exit
PB: predicated region body
PF: predicated region fallthrough
CT: control target
= control target key end

     0   :  { %11 = vsyncpa [#allocation4], 0  ;;  %s975_s0 = inlined_call_operand.<no memory space> [shape: f32[1,1], index: 0, kind: input, shape index: {}]   ;;  %s976_s1 = inlined_call_operand.hbm [shape: f32[16,128], index: 1, kind: input, shape index: {}]   ;;  %s977_s2 = inlined_call_operand.hbm [shape: f32[16,128], index: 2, kind: input, shape index: {}]   ;;  %s978_s3 = inlined_call_operand.hbm [shape: f32[24,128], index: 3, kind: output, shape index: {0}]   ;;  %s979_s4 = inlined_call_operand.hbm [shape: s32[24,128], index: 4, kind: output, shape index: {1}]  }
   0x1   :  { %12 = vsyncpa [#allocation7], 0 }
   0x2   :  { %13 = vsyncpa [#allocation5], 0 }
   0x3   :  { %14 = vsyncpa [#allocation10], 0  ;;  %s824_s15 = smov [#allocation3]  }
   0x4   :  { %s22_s16 = sshll.u32 %s824_s15, 4  ;;  %s23_s16 = int_to_ptr.vmem [resolvable:$true] %s22_s16 }
   0x5   :  { %s744_s17 = scalar_lea.vmem %s23_s16, 256  ;;  %p749_p1 = scmp.lt.s32.totalorder %s23_s16, %s23_s16 }
   0x6   :  { %p745_p0 = scmp.ne.s32.totalorder %s23_s16, %s744_s17  ;;  %p750_p2 = scmp.lt.s32.totalorder %s744_s17, %s744_s17 }
   0x8   :  { %p751_p3 = por %p750_p2, %p749_p1 }
   0xa   :  { %p752_p4 = pnand %p751_p3, %p745_p0 }
   0xc   :  { %755 = shalt.err (!%p752_p4)
}
   0xd   :  { %s825_s18 = smov 128   ;;  %s826_s19 = smov 8  }
   0xe   :  { %28 = dma.hbm_to_vmem [thread:$0]  %s976_s1, 256, %s23_s16, [#allocation4], %s825_s18, %s825_s18, %s826_s19  }
   0xf   :  { %s827_s22 = smov [#allocation6]  }
  0x10   :  { %s34_s23 = sshll.u32 %s827_s22, 4  ;;  %s35_s23 = int_to_ptr.vmem [resolvable:$true] %s34_s23 }
  0x11   :  { %s764_s24 = scalar_lea.vmem %s35_s23, 256  ;;  %p769_p6 = scmp.lt.s32.totalorder %s35_s23, %s35_s23 }
  0x12   :  { %p765_p5 = scmp.ne.s32.totalorder %s35_s23, %s764_s24  ;;  %p770_p7 = scmp.lt.s32.totalorder %s764_s24, %s764_s24 }
  0x14   :  { %p771_p8 = por %p770_p7, %p769_p6 }
  0x16   :  { %p772_p9 = pnand %p771_p8, %p765_p5 }
  0x18   :  { %775 = shalt.err (!%p772_p9)
}
  0x19   :  { %40 = dma.hbm_to_vmem [thread:$0]  %s977_s2, 256, %s35_s23, [#allocation7], %s825_s18, %s825_s18, %s826_s19  }
  0x1a   :  { %816 = dma.done.wait [#allocation4], 256  }
  0x1b   :  { %817 = vsyncadd [#allocation4], 4294967040 }
  0x1c   :  { %818 = dma.done.wait [#allocation7], 256  }
  0x1d   :  { %819 = vsyncadd [#allocation7], 4294967040  ;;  %v828_v0 = vmov 0.0   ;;  %vm829_vm0 = vmmov 0   ;;  %v50_v1 = vld [vmem:[#allocation6 + $0x8] sm:$0xff]  ;;  %v49_v2 = vld [vmem:[#allocation6] sm:$0xff]  ;;  %v131_v5 = vlaneseq  ;;  %v158_v10 = vstv %s975_s0 }
  0x1e   :  { %611 = vmatprep.subr.mxu0 %v828_v0  ;;  %624 = vmatprep.subr.mxu1 %v828_v0  ;;  %v47_v3 = vld [vmem:[#allocation3] sm:$0xff]  ;;  %v48_v4 = vld [vmem:[#allocation3 + $0x8] sm:$0xff]  ;;  %s830_s0 = smov [#allocation8]  }
  0x1f   :  { %615 = vmatprep.mubr.msk.f32.mxu0 %vm829_vm0, %v828_v0  ;;  %618 = vmatprep.mubr.msk.f32.mxu1 %vm829_vm0, %v828_v0  ;;  %v132_v6 = vshrl.u32 %v131_v5, 7  ;;  %v869_v7 = vand.u32 127, %v131_v5  ;;  %s577_s27 = sshll.u32 %s830_s0, 4  ;;  %s578_s27 = int_to_ptr.vmem [resolvable:$true] %s577_s27 }
  0x20   :  { %612 = vmatpush3.xpose.msra.mxu0 %v50_v1  ;;  %626 = vmatpush3.xpose.msra.mxu1 %v50_v1  ;;  %s776_s28 = scalar_lea.vmem %s578_s27, 384  ;;  %p781_p11 = scmp.lt.s32.totalorder %s578_s27, %s578_s27 }
  0x21   :  { %613 = vmatprep.subr.mxu0 %v828_v0  ;;  %625 = vmatprep.subr.mxu1 %v828_v0  ;;  %v134_v8 = vadd.s32 16, %v132_v6  ;;  %vm140_vm1 = vcmp.le.s32.totalorder %v869_v7, 16  ;;  %vm147_vm2 = vcmp.eq.s32.totalorder %v869_v7, 16  ;;  %p777_p10 = scmp.ne.s32.totalorder %s578_s27, %s776_s28  ;;  %p782_p12 = scmp.lt.s32.totalorder %s776_s28, %s776_s28 }
  0x22   :  { %vm875_vm5 = vmand %vm140_vm1, %vm147_vm2 }
  0x23   :  { %vm139_vm3 = vcmp.le.s32.totalorder %v134_v8, 16  ;;  %vm146_vm4 = vcmp.eq.s32.totalorder %v134_v8, 16  ;;  %p783_p13 = por %p782_p12, %p781_p11 }
  0x24   :  { %614 = vmatpush3.xpose.msra.mxu0 %v49_v2  ;;  %627 = vmatpush3.xpose.msra.mxu1 %v49_v2  ;;  %vm884_vm6 = vmand %vm139_vm3, %vm140_vm1 }
  0x25   :  { %vm150_vm7 = vmor %vm146_vm4, %vm147_vm2  ;;  %p784_p0 = pnand %p783_p13, %p777_p10 }
  0x26   :  { %vm153_vm8 = vmand %vm884_vm6, %vm150_vm7 }
  0x27   :  { %616 = vmatmul.mubr.f32.vlgmr.msra.gmra.mxu0 %v47_v3  ;;  %619 = vmatmul.mubr.f32.vlgmr.msra.gmra.mxu1 %v48_v4 }
  0x28   :  { %621 = vmatprep.mubr.msk.f32.mxu1 %vm829_vm0, %v828_v0 }
  0x2b   :  { %622 = vmatmul.mubr.f32.gmra.mxu1 %v828_v0 }
  0xe7   :  { %v117_v12 = vpop.f32.mrf.mxu0  ;;  %v122_v13 = vpop.f32.mrf.mxu1 }
  0xe8   :  { %v155_v14 = vsel %vm140_vm1, %v117_v12, -1e+30  ;;  %v156_v18 = vsel %vm140_vm1, %v122_v13, -1e+30 }
  0xe9   :  { %v617_v15 = vpop.f32.mrf.mxu0  ;;  %v620_v16 = vpop.f32.mrf.mxu1  ;;  %v159_v17 = vsel %vm875_vm5, %v158_v10, %v155_v14  ;;  %v160_v23 = vsel %vm875_vm5, %v158_v10, %v156_v18 }
  0xea   :  { %162 = vmax.xlane.f32.xlu0 %v159_v17 }
  0xeb   :  { %v127_v19 = vpop.f32.mrf.mxu1 }
  0xec   :  { %v157_v20 = vsel %vm884_vm6, %v127_v19, -1e+30 }
  0xed   :  { %v623_v21 = vpop.f32.mrf.mxu1  ;;  %v161_v22 = vsel %vm153_vm8, %v158_v10, %v157_v20 }
  0xee   :  { %166 = vmax.xlane.f32.xlu1 %v161_v22  ;;  %164 = vmax.xlane.f32.xlu0 %v160_v23 }
 0x173   :  { %v163_v24 = vpop.xlane.xlu0 %162 }
 0x174   :  { %v168_v25 = vsub.f32 %v159_v17, %v163_v24 }
 0x176   :  { %v171_v26 = vmul.f32 1.442695, %v168_v25 }
 0x177   :  { %v167_v27 = vpop.xlane.xlu1 %166  ;;  %v165_v28 = vpop.xlane.xlu0 %164 }
 0x178   :  { %636 = vpow2.f32 %v171_v26  ;;  %v170_v29 = vsub.f32 %v161_v22, %v167_v27  ;;  %v169_v30 = vsub.f32 %v160_v23, %v165_v28 }
 0x17a   :  { %v175_v31 = vmul.f32 1.442695, %v170_v29  ;;  %v173_v32 = vmul.f32 1.442695, %v169_v30 }
 0x17c   :  { %638 = vpow2.f32 %v175_v31 }
 0x17d   :  { %640 = vpow2.f32 %v173_v32 }
 0x185   :  { %v637_v33 = vpop.eup %636 }
 0x186   :  { %177 = vadd.xlane.f32.xlu1 %v637_v33 }
 0x189   :  { %v639_v34 = vpop.eup %638 }
 0x18a   :  { %v641_v35 = vpop.eup %640  ;;  %181 = vadd.xlane.f32.xlu1 %v639_v34 }
 0x18b   :  { %179 = vadd.xlane.f32.xlu0 %v641_v35 }
 0x20f   :  { %v178_v36 = vpop.xlane.xlu1 %177 }
 0x210   :  { %642 = vlog2.f32 %v178_v36 }
 0x213   :  { %v182_v37 = vpop.xlane.xlu1 %181 }
 0x214   :  { %644 = vlog2.f32 %v182_v37  ;;  %v180_v38 = vpop.xlane.xlu0 %179 }
 0x215   :  { %646 = vlog2.f32 %v180_v38 }
 0x21d   :  { %v643_v39 = vpop.eup %642 }
 0x21e   :  { %v184_v40 = vmul.f32 0.6931472, %v643_v39 }
 0x220   :  { %v189_v42 = vadd.f32 %v184_v40, %v163_v24 }
 0x221   :  { %v645_v41 = vpop.eup %644 }
 0x222   :  { %v647_v43 = vpop.eup %646  ;;  %v188_v44 = vmul.f32 0.6931472, %v645_v41  ;;  %v192_v47 = vsub.f32 %v159_v17, %v189_v42 }
 0x223   :  { %v186_v45 = vmul.f32 0.6931472, %v647_v43 }
 0x224   :  { %v191_v46 = vadd.f32 %v188_v44, %v167_v27  ;;  %v195_v51 = vsel %vm140_vm1, %v192_v47, -1e+30 }
 0x225   :  { %v190_v48 = vadd.f32 %v186_v45, %v165_v28 }
 0x226   :  { %v194_v49 = vsub.f32 %v161_v22, %v191_v46 }
 0x227   :  { %v193_v50 = vsub.f32 %v160_v23, %v190_v48 }
 0x228   :  { %v197_v54 = vsel %vm884_vm6, %v194_v49, -1e+30 }
 0x229   :  { %v196_v52 = vsel %vm140_vm1, %v193_v50, -1e+30 }
 0x22a   :  { %v198_v53 = vmax.f32 %v195_v51, %v196_v52 }
 0x22c   :  { %v199_v55 = vmax.f32 %v198_v53, %v197_v54 }
 0x22e   :  { %v200_v56 = vrot.slane %v199_v55, 4 }
 0x230   :  { %v201_v57 = vmax.f32 %v199_v55, %v200_v56 }
 0x232   :  { %v202_v58 = vrot.slane %v201_v57, 2 }
 0x234   :  { %v203_v59 = vmax.f32 %v201_v57, %v202_v58 }
 0x236   :  { %v204_v60 = vrot.slane %v203_v59, 1 }
 0x238   :  { %v205_v61 = vmax.f32 %v203_v59, %v204_v60 }
 0x23a   :  { %v206_v62 = vsub.f32 %v195_v51, %v205_v61  ;;  %v207_v63 = vsub.f32 %v196_v52, %v205_v61  ;;  %v208_v0 = vsub.f32 %v197_v54, %v205_v61 }
 0x23c   :  { %v209_v1 = vmul.f32 1.442695, %v206_v62  ;;  %v211_v2 = vmul.f32 1.442695, %v207_v63  ;;  %v213_v3 = vmul.f32 1.442695, %v208_v0 }
 0x23e   :  { %648 = vpow2.f32 %v209_v1 }
 0x23f   :  { %650 = vpow2.f32 %v211_v2 }
 0x240   :  { %652 = vpow2.f32 %v213_v3 }
 0x24b   :  { %v649_v4 = vpop.eup %648 }
 0x24c   :  { %v651_v5 = vpop.eup %650 }
 0x24d   :  { %v215_v6 = vadd.f32 %v651_v5, %v649_v4  ;;  %v653_v8 = vpop.eup %652 }
 0x24f   :  { %v216_v9 = vadd.f32 %v653_v8, %v215_v6 }
 0x251   :  { %v217_v10 = vrot.slane %v216_v9, 4 }
 0x253   :  { %v218_v12 = vadd.f32 %v217_v10, %v216_v9 }
 0x255   :  { %v219_v13 = vrot.slane %v218_v12, 2 }
 0x257   :  { %v220_v14 = vadd.f32 %v219_v13, %v218_v12 }
 0x259   :  { %v221_v15 = vrot.slane %v220_v14, 1 }
 0x25b   :  { %v222_v16 = vadd.f32 %v221_v15, %v220_v14 }
 0x25d   :  { %654 = vlog2.f32 %v222_v16 }
 0x26a   :  { %v655_v17 = vpop.eup %654 }
 0x26b   :  { %v224_v18 = vmul.f32 0.6931472, %v655_v17 }
 0x26d   :  { %v225_v19 = vadd.f32 %v224_v18, %v205_v61 }
 0x26f   :  { %v227_v20 = vsub.f32 %v196_v52, %v225_v19  ;;  %v226_v21 = vsub.f32 %v195_v51, %v225_v19  ;;  %v228_v24 = vsub.f32 %v197_v54, %v225_v19 }
 0x271   :  { %v230_v22 = vsel %vm140_vm1, %v227_v20, -1e+30  ;;  %v229_v23 = vsel %vm140_vm1, %v226_v21, -1e+30  ;;  %v231_v25 = vsel %vm884_vm6, %v228_v24, -1e+30 }
 0x272   :  { %234 = vmax.xlane.f32.xlu1 %v230_v22  ;;  %232 = vmax.xlane.f32.xlu0 %v229_v23 }
 0x276   :  { %236 = vmax.xlane.f32.xlu0 %v231_v25 }
 0x2fb   :  { %v235_v26 = vpop.xlane.xlu1 %234  ;;  %v233_v27 = vpop.xlane.xlu0 %232 }
 0x2fc   :  { %v239_v28 = vsub.f32 %v230_v22, %v235_v26  ;;  %v238_v29 = vsub.f32 %v229_v23, %v233_v27 }
 0x2fe   :  { %v243_v30 = vmul.f32 1.442695, %v239_v28  ;;  %v241_v31 = vmul.f32 1.442695, %v238_v29 }
 0x2ff   :  { %v237_v32 = vpop.xlane.xlu0 %236 }
 0x300   :  { %656 = vpow2.f32 %v243_v30  ;;  %v240_v33 = vsub.f32 %v231_v25, %v237_v32 }
 0x301   :  { %658 = vpow2.f32 %v241_v31 }
 0x302   :  { %v245_v34 = vmul.f32 1.442695, %v240_v33 }
 0x304   :  { %660 = vpow2.f32 %v245_v34 }
 0x30d   :  { %v657_v35 = vpop.eup %656 }
 0x30e   :  { %v659_v36 = vpop.eup %658  ;;  %249 = vadd.xlane.f32.xlu0 %v657_v35 }
 0x30f   :  { %247 = vadd.xlane.f32.xlu1 %v659_v36 }
 0x311   :  { %v661_v37 = vpop.eup %660 }
 0x313   :  { %251 = vadd.xlane.f32.xlu1 %v661_v37 }
 0x397   :  { %v250_v38 = vpop.xlane.xlu0 %249 }
 0x398   :  { %v248_v39 = vpop.xlane.xlu1 %247  ;;  %662 = vlog2.f32 %v250_v38 }
 0x399   :  { %664 = vlog2.f32 %v248_v39 }
 0x39c   :  { %v252_v40 = vpop.xlane.xlu1 %251 }
 0x39d   :  { %666 = vlog2.f32 %v252_v40 }
 0x3a5   :  { %v663_v41 = vpop.eup %662 }
 0x3a6   :  { %v665_v42 = vpop.eup %664  ;;  %v256_v43 = vmul.f32 0.6931472, %v663_v41 }
 0x3a7   :  { %v254_v44 = vmul.f32 0.6931472, %v665_v42 }
 0x3a8   :  { %v260_v45 = vadd.f32 %v256_v43, %v235_v26 }
 0x3a9   :  { %v259_v46 = vadd.f32 %v254_v44, %v233_v27 }
 0x3aa   :  { %v667_v47 = vpop.eup %666  ;;  %v263_v48 = vsub.f32 %v230_v22, %v260_v45 }
 0x3ab   :  { %v262_v49 = vsub.f32 %v229_v23, %v259_v46  ;;  %v258_v50 = vmul.f32 0.6931472, %v667_v47 }
 0x3ac   :  { %v266_v53 = vsel %vm140_vm1, %v263_v48, -1e+30 }
 0x3ad   :  { %v265_v51 = vsel %vm140_vm1, %v262_v49, -1e+30  ;;  %v261_v52 = vadd.f32 %v258_v50, %v237_v32 }
 0x3ae   :  { %v268_v55 = vmax.f32 %v265_v51, %v266_v53 }
 0x3af   :  { %v264_v54 = vsub.f32 %v231_v25, %v261_v52 }
 0x3b1   :  { %v267_v56 = vsel %vm884_vm6, %v264_v54, -1e+30 }
 0x3b2   :  { %v269_v57 = vmax.f32 %v268_v55, %v267_v56 }
 0x3b4   :  { %v270_v58 = vrot.slane %v269_v57, 4 }
 0x3b6   :  { %v271_v59 = vmax.f32 %v269_v57, %v270_v58 }
 0x3b8   :  { %v272_v60 = vrot.slane %v271_v59, 2 }
 0x3ba   :  { %v273_v61 = vmax.f32 %v271_v59, %v272_v60 }
 0x3bc   :  { %v274_v62 = vrot.slane %v273_v61, 1 }
 0x3be   :  { %v275_v63 = vmax.f32 %v273_v61, %v274_v62 }
 0x3c0   :  { %v276_v0 = vsub.f32 %v265_v51, %v275_v63  ;;  %v277_v1 = vsub.f32 %v266_v53, %v275_v63  ;;  %v278_v2 = vsub.f32 %v267_v56, %v275_v63 }
 0x3c2   :  { %v279_v3 = vmul.f32 1.442695, %v276_v0  ;;  %v281_v4 = vmul.f32 1.442695, %v277_v1  ;;  %v283_v5 = vmul.f32 1.442695, %v278_v2 }
 0x3c4   :  { %668 = vpow2.f32 %v279_v3 }
 0x3c5   :  { %670 = vpow2.f32 %v281_v4 }
 0x3c6   :  { %672 = vpow2.f32 %v283_v5 }
 0x3d1   :  { %v669_v6 = vpop.eup %668 }
 0x3d2   :  { %v671_v8 = vpop.eup %670 }
 0x3d3   :  { %v285_v9 = vadd.f32 %v671_v8, %v669_v6  ;;  %v673_v10 = vpop.eup %672 }
 0x3d5   :  { %v286_v12 = vadd.f32 %v673_v10, %v285_v9 }
 0x3d7   :  { %v287_v13 = vrot.slane %v286_v12, 4 }
 0x3d9   :  { %v288_v14 = vadd.f32 %v287_v13, %v286_v12 }
 0x3db   :  { %v289_v15 = vrot.slane %v288_v14, 2 }
 0x3dd   :  { %v290_v16 = vadd.f32 %v289_v15, %v288_v14 }
 0x3df   :  { %v291_v17 = vrot.slane %v290_v16, 1 }
 0x3e1   :  { %v292_v18 = vadd.f32 %v291_v17, %v290_v16 }
 0x3e3   :  { %674 = vlog2.f32 %v292_v18 }
 0x3f0   :  { %v675_v19 = vpop.eup %674 }
 0x3f1   :  { %v294_v20 = vmul.f32 0.6931472, %v675_v19 }
 0x3f3   :  { %v295_v21 = vadd.f32 %v294_v20, %v275_v63 }
 0x3f5   :  { %v297_v22 = vsub.f32 %v266_v53, %v295_v21  ;;  %v296_v23 = vsub.f32 %v265_v51, %v295_v21  ;;  %v298_v26 = vsub.f32 %v267_v56, %v295_v21 }
 0x3f7   :  { %v300_v24 = vsel %vm140_vm1, %v297_v22, -1e+30  ;;  %v299_v25 = vsel %vm140_vm1, %v296_v23, -1e+30  ;;  %v301_v27 = vsel %vm884_vm6, %v298_v26, -1e+30 }
 0x3f8   :  { %304 = vmax.xlane.f32.xlu1 %v300_v24  ;;  %302 = vmax.xlane.f32.xlu0 %v299_v25 }
 0x3fc   :  { %306 = vmax.xlane.f32.xlu0 %v301_v27 }
 0x481   :  { %v305_v28 = vpop.xlane.xlu1 %304  ;;  %v303_v29 = vpop.xlane.xlu0 %302 }
 0x482   :  { %v309_v30 = vsub.f32 %v300_v24, %v305_v28  ;;  %v308_v31 = vsub.f32 %v299_v25, %v303_v29 }
 0x484   :  { %v313_v32 = vmul.f32 1.442695, %v309_v30  ;;  %v311_v33 = vmul.f32 1.442695, %v308_v31 }
 0x485   :  { %v307_v34 = vpop.xlane.xlu0 %306 }
 0x486   :  { %676 = vpow2.f32 %v313_v32  ;;  %v310_v35 = vsub.f32 %v301_v27, %v307_v34 }
 0x487   :  { %678 = vpow2.f32 %v311_v33 }
 0x488   :  { %v315_v36 = vmul.f32 1.442695, %v310_v35 }
 0x48a   :  { %680 = vpow2.f32 %v315_v36 }
 0x493   :  { %v677_v37 = vpop.eup %676 }
 0x494   :  { %v679_v38 = vpop.eup %678  ;;  %319 = vadd.xlane.f32.xlu0 %v677_v37 }
 0x495   :  { %317 = vadd.xlane.f32.xlu1 %v679_v38 }
 0x497   :  { %v681_v39 = vpop.eup %680 }
 0x499   :  { %321 = vadd.xlane.f32.xlu1 %v681_v39 }
 0x51d   :  { %v320_v40 = vpop.xlane.xlu0 %319 }
 0x51e   :  { %v318_v41 = vpop.xlane.xlu1 %317  ;;  %682 = vlog2.f32 %v320_v40 }
 0x51f   :  { %684 = vlog2.f32 %v318_v41 }
 0x522   :  { %v322_v42 = vpop.xlane.xlu1 %321 }
 0x523   :  { %686 = vlog2.f32 %v322_v42 }
 0x52b   :  { %v683_v43 = vpop.eup %682 }
 0x52c   :  { %v685_v44 = vpop.eup %684  ;;  %v326_v45 = vmul.f32 0.6931472, %v683_v43 }
 0x52d   :  { %v324_v46 = vmul.f32 0.6931472, %v685_v44 }
 0x52e   :  { %v330_v47 = vadd.f32 %v326_v45, %v305_v28 }
 0x52f   :  { %v329_v48 = vadd.f32 %v324_v46, %v303_v29 }
 0x530   :  { %v687_v49 = vpop.eup %686  ;;  %v333_v50 = vsub.f32 %v300_v24, %v330_v47 }
 0x531   :  { %v332_v51 = vsub.f32 %v299_v25, %v329_v48  ;;  %v328_v52 = vmul.f32 0.6931472, %v687_v49 }
 0x532   :  { %v336_v55 = vsel %vm140_vm1, %v333_v50, -1e+30 }
 0x533   :  { %v335_v53 = vsel %vm140_vm1, %v332_v51, -1e+30  ;;  %v331_v54 = vadd.f32 %v328_v52, %v307_v34 }
 0x534   :  { %v338_v57 = vmax.f32 %v335_v53, %v336_v55 }
 0x535   :  { %v334_v56 = vsub.f32 %v301_v27, %v331_v54 }
 0x537   :  { %v337_v58 = vsel %vm884_vm6, %v334_v56, -1e+30 }
 0x538   :  { %v339_v59 = vmax.f32 %v338_v57, %v337_v58 }
 0x53a   :  { %v340_v60 = vrot.slane %v339_v59, 4 }
 0x53c   :  { %v341_v61 = vmax.f32 %v339_v59, %v340_v60 }
 0x53e   :  { %v342_v62 = vrot.slane %v341_v61, 2 }
 0x540   :  { %v343_v63 = vmax.f32 %v341_v61, %v342_v62 }
 0x542   :  { %v344_v0 = vrot.slane %v343_v63, 1 }
 0x544   :  { %v345_v1 = vmax.f32 %v343_v63, %v344_v0 }
 0x546   :  { %v346_v2 = vsub.f32 %v335_v53, %v345_v1  ;;  %v347_v3 = vsub.f32 %v336_v55, %v345_v1  ;;  %v348_v4 = vsub.f32 %v337_v58, %v345_v1 }
 0x548   :  { %v349_v5 = vmul.f32 1.442695, %v346_v2  ;;  %v351_v6 = vmul.f32 1.442695, %v347_v3  ;;  %v353_v8 = vmul.f32 1.442695, %v348_v4 }
 0x54a   :  { %688 = vpow2.f32 %v349_v5 }
 0x54b   :  { %690 = vpow2.f32 %v351_v6 }
 0x54c   :  { %692 = vpow2.f32 %v353_v8 }
 0x557   :  { %v689_v9 = vpop.eup %688 }
 0x558   :  { %v691_v10 = vpop.eup %690 }
 0x559   :  { %v355_v12 = vadd.f32 %v691_v10, %v689_v9  ;;  %v693_v13 = vpop.eup %692 }
 0x55b   :  { %v356_v14 = vadd.f32 %v693_v13, %v355_v12 }
 0x55d   :  { %v357_v15 = vrot.slane %v356_v14, 4 }
 0x55f   :  { %v358_v16 = vadd.f32 %v357_v15, %v356_v14 }
 0x561   :  { %v359_v17 = vrot.slane %v358_v16, 2 }
 0x563   :  { %v360_v18 = vadd.f32 %v359_v17, %v358_v16 }
 0x565   :  { %v361_v19 = vrot.slane %v360_v18, 1 }
 0x567   :  { %v362_v20 = vadd.f32 %v361_v19, %v360_v18 }
 0x569   :  { %694 = vlog2.f32 %v362_v20 }
 0x576   :  { %v695_v21 = vpop.eup %694 }
 0x577   :  { %v364_v22 = vmul.f32 0.6931472, %v695_v21 }
 0x579   :  { %v365_v23 = vadd.f32 %v364_v22, %v345_v1 }
 0x57b   :  { %v367_v24 = vsub.f32 %v336_v55, %v365_v23  ;;  %v366_v25 = vsub.f32 %v335_v53, %v365_v23  ;;  %v368_v28 = vsub.f32 %v337_v58, %v365_v23 }
 0x57d   :  { %v370_v26 = vsel %vm140_vm1, %v367_v24, -1e+30  ;;  %v369_v27 = vsel %vm140_vm1, %v366_v25, -1e+30  ;;  %v371_v29 = vsel %vm884_vm6, %v368_v28, -1e+30 }
 0x57e   :  { %374 = vmax.xlane.f32.xlu1 %v370_v26  ;;  %372 = vmax.xlane.f32.xlu0 %v369_v27 }
 0x582   :  { %376 = vmax.xlane.f32.xlu0 %v371_v29 }
 0x607   :  { %v375_v30 = vpop.xlane.xlu1 %374  ;;  %v373_v31 = vpop.xlane.xlu0 %372 }
 0x608   :  { %v379_v32 = vsub.f32 %v370_v26, %v375_v30  ;;  %v378_v33 = vsub.f32 %v369_v27, %v373_v31 }
 0x60a   :  { %v383_v34 = vmul.f32 1.442695, %v379_v32  ;;  %v381_v35 = vmul.f32 1.442695, %v378_v33 }
 0x60b   :  { %v377_v36 = vpop.xlane.xlu0 %376 }
 0x60c   :  { %696 = vpow2.f32 %v383_v34  ;;  %v380_v37 = vsub.f32 %v371_v29, %v377_v36 }
 0x60d   :  { %698 = vpow2.f32 %v381_v35 }
 0x60e   :  { %v385_v38 = vmul.f32 1.442695, %v380_v37 }
 0x610   :  { %700 = vpow2.f32 %v385_v38 }
 0x619   :  { %v697_v39 = vpop.eup %696 }
 0x61a   :  { %v699_v40 = vpop.eup %698  ;;  %389 = vadd.xlane.f32.xlu0 %v697_v39 }
 0x61b   :  { %387 = vadd.xlane.f32.xlu1 %v699_v40 }
 0x61d   :  { %v701_v41 = vpop.eup %700 }
 0x61f   :  { %391 = vadd.xlane.f32.xlu1 %v701_v41 }
 0x6a3   :  { %v390_v42 = vpop.xlane.xlu0 %389 }
 0x6a4   :  { %v388_v43 = vpop.xlane.xlu1 %387  ;;  %702 = vlog2.f32 %v390_v42 }
 0x6a5   :  { %704 = vlog2.f32 %v388_v43 }
 0x6a8   :  { %v392_v44 = vpop.xlane.xlu1 %391 }
 0x6a9   :  { %706 = vlog2.f32 %v392_v44 }
 0x6b1   :  { %v703_v45 = vpop.eup %702 }
 0x6b2   :  { %v705_v46 = vpop.eup %704  ;;  %v396_v47 = vmul.f32 0.6931472, %v703_v45 }
 0x6b3   :  { %v394_v48 = vmul.f32 0.6931472, %v705_v46 }
 0x6b4   :  { %v400_v49 = vadd.f32 %v396_v47, %v375_v30 }
 0x6b5   :  { %v399_v50 = vadd.f32 %v394_v48, %v373_v31 }
 0x6b6   :  { %v707_v51 = vpop.eup %706  ;;  %v403_v52 = vsub.f32 %v370_v26, %v400_v49 }
 0x6b7   :  { %v402_v53 = vsub.f32 %v369_v27, %v399_v50  ;;  %v398_v54 = vmul.f32 0.6931472, %v707_v51 }
 0x6b8   :  { %v406_v57 = vsel %vm140_vm1, %v403_v52, -1e+30 }
 0x6b9   :  { %v405_v55 = vsel %vm140_vm1, %v402_v53, -1e+30  ;;  %v401_v56 = vadd.f32 %v398_v54, %v377_v36 }
 0x6ba   :  { %v408_v59 = vmax.f32 %v405_v55, %v406_v57 }
 0x6bb   :  { %v404_v58 = vsub.f32 %v371_v29, %v401_v56 }
 0x6bd   :  { %v407_v60 = vsel %vm884_vm6, %v404_v58, -1e+30 }
 0x6be   :  { %v409_v61 = vmax.f32 %v408_v59, %v407_v60 }
 0x6c0   :  { %v410_v62 = vrot.slane %v409_v61, 4 }
 0x6c2   :  { %v411_v63 = vmax.f32 %v409_v61, %v410_v62 }
 0x6c4   :  { %v412_v0 = vrot.slane %v411_v63, 2 }
 0x6c6   :  { %v413_v1 = vmax.f32 %v411_v63, %v412_v0 }
 0x6c8   :  { %v414_v2 = vrot.slane %v413_v1, 1 }
 0x6ca   :  { %v415_v3 = vmax.f32 %v413_v1, %v414_v2 }
 0x6cc   :  { %v416_v4 = vsub.f32 %v405_v55, %v415_v3  ;;  %v417_v5 = vsub.f32 %v406_v57, %v415_v3  ;;  %v418_v6 = vsub.f32 %v407_v60, %v415_v3 }
 0x6ce   :  { %v419_v8 = vmul.f32 1.442695, %v416_v4  ;;  %v421_v9 = vmul.f32 1.442695, %v417_v5  ;;  %v423_v10 = vmul.f32 1.442695, %v418_v6 }
 0x6d0   :  { %708 = vpow2.f32 %v419_v8 }
 0x6d1   :  { %710 = vpow2.f32 %v421_v9 }
 0x6d2   :  { %712 = vpow2.f32 %v423_v10 }
 0x6dd   :  { %v709_v12 = vpop.eup %708 }
 0x6de   :  { %v711_v13 = vpop.eup %710 }
 0x6df   :  { %v425_v14 = vadd.f32 %v711_v13, %v709_v12  ;;  %v713_v15 = vpop.eup %712 }
 0x6e1   :  { %v426_v16 = vadd.f32 %v713_v15, %v425_v14 }
 0x6e3   :  { %v427_v17 = vrot.slane %v426_v16, 4 }
 0x6e5   :  { %v428_v18 = vadd.f32 %v427_v17, %v426_v16 }
 0x6e7   :  { %v429_v19 = vrot.slane %v428_v18, 2 }
 0x6e9   :  { %v430_v20 = vadd.f32 %v429_v19, %v428_v18 }
 0x6eb   :  { %v431_v21 = vrot.slane %v430_v20, 1 }
 0x6ed   :  { %v432_v22 = vadd.f32 %v431_v21, %v430_v20 }
 0x6ef   :  { %714 = vlog2.f32 %v432_v22 }
 0x6fc   :  { %v715_v23 = vpop.eup %714 }
 0x6fd   :  { %v434_v24 = vmul.f32 0.6931472, %v715_v23 }
 0x6ff   :  { %v435_v25 = vadd.f32 %v434_v24, %v415_v3 }
 0x701   :  { %v437_v26 = vsub.f32 %v406_v57, %v435_v25  ;;  %v436_v27 = vsub.f32 %v405_v55, %v435_v25  ;;  %v438_v30 = vsub.f32 %v407_v60, %v435_v25 }
 0x703   :  { %v440_v28 = vsel %vm140_vm1, %v437_v26, -1e+30  ;;  %v439_v29 = vsel %vm140_vm1, %v436_v27, -1e+30  ;;  %v441_v31 = vsel %vm884_vm6, %v438_v30, -1e+30 }
 0x704   :  { %444 = vmax.xlane.f32.xlu1 %v440_v28  ;;  %442 = vmax.xlane.f32.xlu0 %v439_v29 }
 0x708   :  { %446 = vmax.xlane.f32.xlu0 %v441_v31 }
 0x78d   :  { %v445_v32 = vpop.xlane.xlu1 %444  ;;  %v443_v33 = vpop.xlane.xlu0 %442 }
 0x78e   :  { %v449_v34 = vsub.f32 %v440_v28, %v445_v32  ;;  %v448_v35 = vsub.f32 %v439_v29, %v443_v33 }
 0x790   :  { %v453_v36 = vmul.f32 1.442695, %v449_v34  ;;  %v451_v37 = vmul.f32 1.442695, %v448_v35 }
 0x791   :  { %v447_v38 = vpop.xlane.xlu0 %446 }
 0x792   :  { %716 = vpow2.f32 %v453_v36  ;;  %v450_v39 = vsub.f32 %v441_v31, %v447_v38 }
 0x793   :  { %718 = vpow2.f32 %v451_v37 }
 0x794   :  { %v455_v40 = vmul.f32 1.442695, %v450_v39 }
 0x796   :  { %720 = vpow2.f32 %v455_v40 }
 0x79f   :  { %v717_v41 = vpop.eup %716 }
 0x7a0   :  { %v719_v42 = vpop.eup %718  ;;  %459 = vadd.xlane.f32.xlu0 %v717_v41 }
 0x7a1   :  { %457 = vadd.xlane.f32.xlu1 %v719_v42 }
 0x7a3   :  { %v721_v43 = vpop.eup %720 }
 0x7a5   :  { %461 = vadd.xlane.f32.xlu1 %v721_v43 }
 0x829   :  { %v460_v44 = vpop.xlane.xlu0 %459 }
 0x82a   :  { %v458_v45 = vpop.xlane.xlu1 %457  ;;  %722 = vlog2.f32 %v460_v44 }
 0x82b   :  { %724 = vlog2.f32 %v458_v45 }
 0x82e   :  { %v462_v46 = vpop.xlane.xlu1 %461 }
 0x82f   :  { %726 = vlog2.f32 %v462_v46 }
 0x837   :  { %v723_v47 = vpop.eup %722 }
 0x838   :  { %v725_v48 = vpop.eup %724  ;;  %v466_v49 = vmul.f32 0.6931472, %v723_v47 }
 0x839   :  { %v464_v50 = vmul.f32 0.6931472, %v725_v48 }
 0x83a   :  { %v470_v51 = vadd.f32 %v466_v49, %v445_v32 }
 0x83b   :  { %v469_v52 = vadd.f32 %v464_v50, %v443_v33 }
 0x83c   :  { %v727_v53 = vpop.eup %726  ;;  %v473_v54 = vsub.f32 %v440_v28, %v470_v51 }
 0x83d   :  { %v472_v55 = vsub.f32 %v439_v29, %v469_v52  ;;  %v468_v56 = vmul.f32 0.6931472, %v727_v53 }
 0x83e   :  { %v476_v59 = vsel %vm140_vm1, %v473_v54, -1e+30 }
 0x83f   :  { %v475_v57 = vsel %vm140_vm1, %v472_v55, -1e+30  ;;  %v471_v58 = vadd.f32 %v468_v56, %v447_v38 }
 0x840   :  { %v478_v61 = vmax.f32 %v475_v57, %v476_v59 }
 0x841   :  { %v474_v60 = vsub.f32 %v441_v31, %v471_v58 }
 0x843   :  { %v477_v62 = vsel %vm884_vm6, %v474_v60, -1e+30 }
 0x844   :  { %v479_v63 = vmax.f32 %v478_v61, %v477_v62 }
 0x846   :  { %v480_v0 = vrot.slane %v479_v63, 4 }
 0x848   :  { %v481_v1 = vmax.f32 %v479_v63, %v480_v0 }
 0x84a   :  { %v482_v2 = vrot.slane %v481_v1, 2 }
 0x84c   :  { %v483_v3 = vmax.f32 %v481_v1, %v482_v2 }
 0x84e   :  { %v484_v4 = vrot.slane %v483_v3, 1 }
 0x850   :  { %v485_v5 = vmax.f32 %v483_v3, %v484_v4 }
 0x852   :  { %v486_v6 = vsub.f32 %v475_v57, %v485_v5  ;;  %v487_v8 = vsub.f32 %v476_v59, %v485_v5  ;;  %v488_v9 = vsub.f32 %v477_v62, %v485_v5 }
 0x854   :  { %v489_v10 = vmul.f32 1.442695, %v486_v6  ;;  %v491_v12 = vmul.f32 1.442695, %v487_v8  ;;  %v493_v13 = vmul.f32 1.442695, %v488_v9 }
 0x856   :  { %728 = vpow2.f32 %v489_v10 }
 0x857   :  { %730 = vpow2.f32 %v491_v12 }
 0x858   :  { %732 = vpow2.f32 %v493_v13 }
 0x863   :  { %v729_v14 = vpop.eup %728 }
 0x864   :  { %v731_v15 = vpop.eup %730 }
 0x865   :  { %v495_v16 = vadd.f32 %v731_v15, %v729_v14  ;;  %v733_v17 = vpop.eup %732 }
 0x867   :  { %v496_v18 = vadd.f32 %v733_v17, %v495_v16 }
 0x869   :  { %v497_v19 = vrot.slane %v496_v18, 4 }
 0x86b   :  { %v498_v20 = vadd.f32 %v497_v19, %v496_v18 }
 0x86d   :  { %v499_v21 = vrot.slane %v498_v20, 2 }
 0x86f   :  { %v500_v22 = vadd.f32 %v499_v21, %v498_v20 }
 0x871   :  { %v501_v23 = vrot.slane %v500_v22, 1 }
 0x873   :  { %v502_v24 = vadd.f32 %v501_v23, %v500_v22 }
 0x875   :  { %734 = vlog2.f32 %v502_v24 }
 0x882   :  { %v735_v25 = vpop.eup %734 }
 0x883   :  { %v504_v26 = vmul.f32 0.6931472, %v735_v25 }
 0x885   :  { %v505_v27 = vadd.f32 %v504_v26, %v485_v5 }
 0x887   :  { %v507_v28 = vsub.f32 %v476_v59, %v505_v27  ;;  %v506_v29 = vsub.f32 %v475_v57, %v505_v27  ;;  %v508_v30 = vsub.f32 %v477_v62, %v505_v27 }
 0x889   :  { %v510_v31 = vsel %vm140_vm1, %v507_v28, -1e+30  ;;  %v509_v32 = vsel %vm140_vm1, %v506_v29, -1e+30  ;;  %v511_v33 = vsel %vm884_vm6, %v508_v30, -1e+30 }
 0x88a   :  { %517 = vmax.xlane.f32.xlu1 %v510_v31  ;;  %513 = vst [vmem:[#allocation8 + $0x8] sm:$0xff] %v510_v31  ;;  %515 = vmax.xlane.f32.xlu0 %v509_v32  ;;  %512 = vst [vmem:[#allocation8] sm:$0xff] %v509_v32 }
 0x88b   :  { %514 = vst [vmem:[#allocation8 + $0x10] sm:$0xff] %v511_v33 }
 0x88e   :  { %519 = vmax.xlane.f32.xlu0 %v511_v33 }
 0x913   :  { %v518_v34 = vpop.xlane.xlu1 %517  ;;  %v516_v35 = vpop.xlane.xlu0 %515 }
 0x914   :  { %vm522_vm9 = vcmp.ge.f32.partialorder %v510_v31, %v518_v34  ;;  %vm521_vm10 = vcmp.ge.f32.partialorder %v509_v32, %v516_v35 }
 0x915   :  { %v525_v36 = vsel %vm522_vm9, %v869_v7, 128  ;;  %v524_v37 = vsel %vm521_vm10, %v869_v7, 128 }
 0x916   :  { %v542_v38 = vshra.s32 %v525_v36, 16  ;;  %v528_v39 = vshra.s32 %v524_v37, 16  ;;  %v541_v45 = vand.u32 65535, %v525_v36  ;;  %v527_v46 = vand.u32 65535, %v524_v37 }
 0x917   :  { %v520_v40 = vpop.xlane.xlu0 %519 }
 0x918   :  { %vm523_vm11 = vcmp.ge.f32.partialorder %v511_v33, %v520_v40  ;;  %v544_v11 = vcvt.s32.f32 %v542_v38  ;;  %v530_v41 = vcvt.s32.f32 %v528_v39  ;;  %v529_v50 = vcvt.s32.f32 %v527_v46 }
 0x919   :  { %v526_v42 = vsel %vm523_vm11, %v869_v7, 128  ;;  %v543_v51 = vcvt.s32.f32 %v541_v45 }
 0x91a   :  { %545 = vmin.xlane.f32.xlu0 %v544_v11  ;;  %531 = vmin.xlane.f32.xlu1 %v530_v41  ;;  %v556_v43 = vshra.s32 %v526_v42, 16  ;;  %v555_v47 = vand.u32 65535, %v526_v42 }
 0x91c   :  { %v558_v44 = vcvt.s32.f32 %v556_v43  ;;  %v557_v7 = vcvt.s32.f32 %v555_v47 }
 0x91e   :  { %559 = vmin.xlane.f32.xlu1 %v558_v44 }
 0x9a3   :  { %v532_v48 = vpop.xlane.xlu1 %531  ;;  %v546_v49 = vpop.xlane.xlu0 %545 }
 0x9a4   :  { %vm533_vm12 = vcmp.eq.f32.partialorder %v530_v41, %v532_v48  ;;  %vm547_vm13 = vcmp.eq.f32.partialorder %v544_v11, %v546_v49 }
 0x9a5   :  { %v534_v52 = vsel %vm533_vm12, %v529_v50, inf  ;;  %v548_v53 = vsel %vm547_vm13, %v543_v51, inf }
 0x9a6   :  { %535 = vmin.xlane.f32.xlu0 %v534_v52  ;;  %549 = vmin.xlane.f32.xlu1 %v548_v53 }
 0x9a7   :  { %v560_v54 = vpop.xlane.xlu1 %559 }
 0x9a8   :  { %vm561_vm14 = vcmp.eq.f32.partialorder %v558_v44, %v560_v54 }
 0x9a9   :  { %v562_v55 = vsel %vm561_vm14, %v557_v7, inf }
 0x9aa   :  { %563 = vmin.xlane.f32.xlu0 %v562_v55 }
 0x9ab   :  { %787 = shalt.err (!%p784_p0)
}
 0x9ac   :  { %583 = dma.vmem_to_hbm [thread:$0]  %s578_s27, 384, %s978_s3, [#allocation5], %s825_s18, %s825_s18, %s826_s19   ;;  %v538_v56 = vcvt.f32.s32 %v532_v48  ;;  %v552_v57 = vcvt.f32.s32 %v546_v49  ;;  %v566_v62 = vcvt.f32.s32 %v560_v54 }
 0x9ad   :  { %s831_s5 = smov [#allocation9]  }
 0x9ae   :  { %v539_v58 = vshll.u32 %v538_v56, 16  ;;  %v553_v61 = vshll.u32 %v552_v57, 16  ;;  %s589_s6 = sshll.u32 %s831_s5, 4  ;;  %v567_v4 = vshll.u32 %v566_v62, 16  ;;  %s590_s6 = int_to_ptr.vmem [resolvable:$true] %s589_s6 }
 0x9af   :  { %s796_s3 = scalar_lea.vmem %s590_s6, 384  ;;  %p801_p2 = scmp.lt.s32.totalorder %s590_s6, %s590_s6 }
 0x9b0   :  { %p797_p1 = scmp.ne.s32.totalorder %s590_s6, %s796_s3  ;;  %p802_p3 = scmp.lt.s32.totalorder %s796_s3, %s796_s3 }
 0x9b2   :  { %p803_p4 = por %p802_p3, %p801_p2 }
 0x9b4   :  { %p804_p5 = pnand %p803_p4, %p797_p1 }
 0xa2f   :  { %v550_v59 = vpop.xlane.xlu1 %549  ;;  %v536_v60 = vpop.xlane.xlu0 %535 }
 0xa30   :  { %v551_v63 = vcvt.f32.s32 %v550_v59  ;;  %v537_v0 = vcvt.f32.s32 %v536_v60 }
 0xa32   :  { %v554_v1 = vadd.s32 %v553_v61, %v551_v63  ;;  %v540_v2 = vadd.s32 %v539_v58, %v537_v0 }
 0xa33   :  { %v564_v3 = vpop.xlane.xlu0 %563 }
 0xa34   :  { %570 = vst [vmem:[#allocation9 + $0x8] sm:$0xff] %v554_v1  ;;  %569 = vst [vmem:[#allocation9] sm:$0xff] %v540_v2  ;;  %v565_v5 = vcvt.f32.s32 %v564_v3 }
 0xa36   :  { %v568_v6 = vadd.s32 %v567_v4, %v565_v5 }
 0xa38   :  { %571 = vst [vmem:[#allocation9 + $0x10] sm:$0xff] %v568_v6 }
 0xa39   :  { %807 = shalt.err (!%p804_p5)
}
 0xa3a   :  { %595 = dma.vmem_to_hbm [thread:$0]  %s590_s6, 384, %s979_s4, [#allocation10], %s825_s18, %s825_s18, %s826_s19  }
 0xa3b   :  { %820 = dma.done.wait [#allocation5], 384  }
 0xa3c   :  { %821 = vsyncadd [#allocation5], 4294966912 }
 0xa3d   :  { %822 = dma.done.wait [#allocation10], 384  }
 0xa3e   :  { %823 = vsyncadd [#allocation10], 4294966912 }
 0xa3f   :  { %602 = vsyncpa [#allocation4], 1 }
 0xa40   :  { %603 = vsyncpa [#allocation7], 1 }
 0xa41   :  { %604 = vsyncpa [#allocation5], 1 }
 0xa42   :  { %605 = vsyncpa [#allocation10], 1 }

</bundles_post_ra>
